<compile_context>
chip_gen: v7x
topology: tpu7x:2x2x1
jax: 0.10.0
libtpu: 0.0.40
codegen_flags: <defaults>
</compile_context>

<pallas_src>
import functools

import jax
import jax.numpy as jnp
from jax.experimental import pallas as pl
from jax.experimental.pallas import tpu as pltpu


LOG_STD_MIN = -20.0
LOG_STD_MAX = 2.0


# ----------------------------------------------------------------------------
# Fused Pallas kernel: entire MLP in one launch, weights resident in VMEM.
# ----------------------------------------------------------------------------
def _policy_sac_kernel(s_ref, w1_ref, b1_ref, w2_ref, b2_ref,
                       wm_ref, bm_ref, ws_ref, bs_ref,
                       mean_ref, log_std_ref,
                       *, log_std_min, log_std_max):
    x = s_ref[...]                                                   # (M, D)

    # linear1 + ReLU
    h = jnp.dot(x, w1_ref[...], preferred_element_type=jnp.float32) + b1_ref[...]
    h = jnp.maximum(h, 0.0)

    # linear2 + ReLU
    h = jnp.dot(h, w2_ref[...], preferred_element_type=jnp.float32) + b2_ref[...]
    h = jnp.maximum(h, 0.0)

    # mean head (h stays in vregs; no re-read / extra launch)
    mean = jnp.dot(h, wm_ref[...], preferred_element_type=jnp.float32) + bm_ref[...]
    mean_ref[...] = mean.astype(mean_ref.dtype)

    # log_std head + clamp fused in the epilogue
    log_std = jnp.dot(h, ws_ref[...], preferred_element_type=jnp.float32) + bs_ref[...]
    log_std = jnp.clip(log_std, log_std_min, log_std_max)
    log_std_ref[...] = log_std.astype(log_std_ref.dtype)


def _vmem_spec():
    return pl.BlockSpec(memory_space=pltpu.MemorySpace.VMEM)


@jax.jit
def policy_sac_forward(params, state):
    """Returns (mean, log_std) exactly like PolicyNetworkSAC.forward."""
    state = state.astype(jnp.float32)
    M = state.shape[0]
    num_actions = params["mean"][0].shape[1]

    w1, b1 = params["linear1"]
    w2, b2 = params["linear2"]
    wm, bm = params["mean"]
    ws, bs = params["log_std"]

    kernel = functools.partial(
        _policy_sac_kernel,
        log_std_min=LOG_STD_MIN,
        log_std_max=LOG_STD_MAX,
    )

    mean, log_std = pl.pallas_call(
        kernel,
        out_shape=(
            jax.ShapeDtypeStruct((M, num_actions), jnp.float32),
            jax.ShapeDtypeStruct((M, num_actions), jnp.float32),
        ),
        in_specs=[_vmem_spec()] * 9,
        out_specs=(_vmem_spec(), _vmem_spec()),
    )(
        state,
        w1, b1.reshape(1, -1),
        w2, b2.reshape(1, -1),
        wm, bm.reshape(1, -1),
        ws, bs.reshape(1, -1),
    )
    return mean, log_std


# ----------------------------------------------------------------------------
# Deterministic synthetic parameters (weights stored as (in, out)).
# ----------------------------------------------------------------------------
def init_params(key, vector_size, num_actions):
    hidden = [128, 64]

    def nxt():
        nonlocal key
        key, sub = jax.random.split(key)
        return sub

    def linear(fan_in, fan_out):
        bound = 1.0 / jnp.sqrt(jnp.float32(fan_in))
        w = jax.random.uniform(nxt(), (fan_in, fan_out), jnp.float32, -bound, bound)
        b = jax.random.uniform(nxt(), (fan_out,), jnp.float32, -bound, bound)
        return w, b

    return {
        "linear1": linear(vector_size, hidden[0]),
        "linear2": linear(hidden[0], hidden[1]),
        "mean": linear(hidden[1], num_actions),
        "log_std": linear(hidden[1], num_actions),
    }


# ----------------------------------------------------------------------------
if __name__ == "__main__":
    vector_size, num_actions, batch = 32, 4, 2

    key = jax.random.PRNGKey(0)
    pkey, skey = jax.random.split(key)

    params = init_params(pkey, vector_size, num_actions)
    state = jax.random.normal(skey, (batch, vector_size), dtype=jnp.float32)

    mean, log_std = jax.block_until_ready(policy_sac_forward(params, state))

    # reference check in plain JAX (same math, no Pallas)
    h = jnp.maximum(state @ params["linear1"][0] + params["linear1"][1], 0.0)
    h = jnp.maximum(h @ params["linear2"][0] + params["linear2"][1], 0.0)
    mean_ref = h @ params["mean"][0] + params["mean"][1]
    log_std_ref = jnp.clip(h @ params["log_std"][0] + params["log_std"][1],
                           LOG_STD_MIN, LOG_STD_MAX)

    assert mean.shape == (batch, num_actions)
    assert log_std.shape == (batch, num_actions)
    assert bool(jnp.all(jnp.isfinite(mean)))
    assert bool(jnp.all(jnp.isfinite(log_std)))
    assert bool(jnp.all(log_std >= LOG_STD_MIN)) and bool(jnp.all(log_std <= LOG_STD_MAX))
    assert bool(jnp.allclose(mean, mean_ref, atol=1e-5, rtol=1e-5))
    assert bool(jnp.allclose(log_std, log_std_ref, atol=1e-5, rtol=1e-5))

    print("KERNEL_OK")
</pallas_src>

<mosaic_0001>
module attributes {stable_mosaic.version = 11 : i64} {
  func.func @_policy_sac_kernel(%arg0: memref<2x32xf32, #tpu.memory_space<vmem>>, %arg1: memref<32x128xf32, #tpu.memory_space<vmem>>, %arg2: memref<1x128xf32, #tpu.memory_space<vmem>>, %arg3: memref<128x64xf32, #tpu.memory_space<vmem>>, %arg4: memref<1x64xf32, #tpu.memory_space<vmem>>, %arg5: memref<64x4xf32, #tpu.memory_space<vmem>>, %arg6: memref<1x4xf32, #tpu.memory_space<vmem>>, %arg7: memref<64x4xf32, #tpu.memory_space<vmem>>, %arg8: memref<1x4xf32, #tpu.memory_space<vmem>>, %arg9: memref<2x4xf32, #tpu.memory_space<vmem>>, %arg10: memref<2x4xf32, #tpu.memory_space<vmem>>) attributes {dimension_semantics = [], scalar_prefetch = 0 : i64, scratch_operands = 0 : i64, tpu.core_type = #tpu.core_type<tc>} {
    %c0 = arith.constant 0 : index
    %c0_0 = arith.constant 0 : index
    %0 = vector.load %arg0[%c0, %c0_0] : memref<2x32xf32, #tpu.memory_space<vmem>>, vector<2x32xf32>
    %c0_1 = arith.constant 0 : index
    %c0_2 = arith.constant 0 : index
    %1 = vector.load %arg1[%c0_1, %c0_2] : memref<32x128xf32, #tpu.memory_space<vmem>>, vector<32x128xf32>
    %cst = arith.constant dense<0.000000e+00> : vector<2x128xf32>
    %2 = tpu.matmul %0, %1, %cst {dimension_numbers = #tpu.dot_dimension_numbers<[1], [0], [0], [1], [0, 0, 1, 1], [], []>} : vector<2x32xf32>, vector<32x128xf32>, vector<2x128xf32> -> vector<2x128xf32>
    %c0_3 = arith.constant 0 : index
    %c0_4 = arith.constant 0 : index
    %3 = vector.load %arg2[%c0_3, %c0_4] : memref<1x128xf32, #tpu.memory_space<vmem>>, vector<1x128xf32>
    %4 = vector.broadcast %3 : vector<1x128xf32> to vector<2x128xf32>
    %5 = arith.addf %2, %4 : vector<2x128xf32>
    %cst_5 = arith.constant 0.000000e+00 : f32
    %6 = vector.broadcast %cst_5 : f32 to vector<2x128xf32>
    %7 = arith.maximumf %5, %6 : vector<2x128xf32>
    %c0_6 = arith.constant 0 : index
    %c0_7 = arith.constant 0 : index
    %8 = vector.load %arg3[%c0_6, %c0_7] : memref<128x64xf32, #tpu.memory_space<vmem>>, vector<128x64xf32>
    %cst_8 = arith.constant dense<0.000000e+00> : vector<2x64xf32>
    %9 = tpu.matmul %7, %8, %cst_8 {dimension_numbers = #tpu.dot_dimension_numbers<[1], [0], [0], [1], [0, 0, 1, 1], [], []>} : vector<2x128xf32>, vector<128x64xf32>, vector<2x64xf32> -> vector<2x64xf32>
    %c0_9 = arith.constant 0 : index
    %c0_10 = arith.constant 0 : index
    %10 = vector.load %arg4[%c0_9, %c0_10] : memref<1x64xf32, #tpu.memory_space<vmem>>, vector<1x64xf32>
    %11 = vector.broadcast %10 : vector<1x64xf32> to vector<2x64xf32>
    %12 = arith.addf %9, %11 : vector<2x64xf32>
    %cst_11 = arith.constant 0.000000e+00 : f32
    %13 = vector.broadcast %cst_11 : f32 to vector<2x64xf32>
    %14 = arith.maximumf %12, %13 : vector<2x64xf32>
    %c0_12 = arith.constant 0 : index
    %c0_13 = arith.constant 0 : index
    %15 = vector.load %arg5[%c0_12, %c0_13] : memref<64x4xf32, #tpu.memory_space<vmem>>, vector<64x4xf32>
    %cst_14 = arith.constant dense<0.000000e+00> : vector<2x4xf32>
    %16 = tpu.matmul %14, %15, %cst_14 {dimension_numbers = #tpu.dot_dimension_numbers<[1], [0], [0], [1], [0, 0, 1, 1], [], []>} : vector<2x64xf32>, vector<64x4xf32>, vector<2x4xf32> -> vector<2x4xf32>
    %c0_15 = arith.constant 0 : index
    %c0_16 = arith.constant 0 : index
    %17 = vector.load %arg6[%c0_15, %c0_16] : memref<1x4xf32, #tpu.memory_space<vmem>>, vector<1x4xf32>
    %18 = vector.broadcast %17 : vector<1x4xf32> to vector<2x4xf32>
    %19 = arith.addf %16, %18 : vector<2x4xf32>
    %c0_17 = arith.constant 0 : index
    %c0_18 = arith.constant 0 : index
    %20 = vector.load %arg9[%c0_17, %c0_18] : memref<2x4xf32, #tpu.memory_space<vmem>>, vector<2x4xf32>
    tpu.vector_store %arg9[%c0_17, %c0_18], %19 {strides = array<i32>} : memref<2x4xf32, #tpu.memory_space<vmem>>, vector<2x4xf32>,
    %c0_19 = arith.constant 0 : index
    %c0_20 = arith.constant 0 : index
    %21 = vector.load %arg7[%c0_19, %c0_20] : memref<64x4xf32, #tpu.memory_space<vmem>>, vector<64x4xf32>
    %cst_21 = arith.constant dense<0.000000e+00> : vector<2x4xf32>
    %22 = tpu.matmul %14, %21, %cst_21 {dimension_numbers = #tpu.dot_dimension_numbers<[1], [0], [0], [1], [0, 0, 1, 1], [], []>} : vector<2x64xf32>, vector<64x4xf32>, vector<2x4xf32> -> vector<2x4xf32>
    %c0_22 = arith.constant 0 : index
    %c0_23 = arith.constant 0 : index
    %23 = vector.load %arg8[%c0_22, %c0_23] : memref<1x4xf32, #tpu.memory_space<vmem>>, vector<1x4xf32>
    %24 = vector.broadcast %23 : vector<1x4xf32> to vector<2x4xf32>
    %25 = arith.addf %22, %24 : vector<2x4xf32>
    %cst_24 = arith.constant -2.000000e+01 : f32
    %cst_25 = arith.constant 2.000000e+00 : f32
    %26 = vector.broadcast %cst_24 : f32 to vector<2x4xf32>
    %27 = arith.maximumf %26, %25 : vector<2x4xf32>
    %28 = vector.broadcast %cst_25 : f32 to vector<2x4xf32>
    %29 = arith.minimumf %28, %27 : vector<2x4xf32>
    %c0_26 = arith.constant 0 : index
    %c0_27 = arith.constant 0 : index
    %30 = vector.load %arg10[%c0_26, %c0_27] : memref<2x4xf32, #tpu.memory_space<vmem>>, vector<2x4xf32>
    tpu.vector_store %arg10[%c0_26, %c0_27], %29 {strides = array<i32>} : memref<2x4xf32, #tpu.memory_space<vmem>>, vector<2x4xf32>,
    return
  }
}

</mosaic_0001>

<bundles_post_ra>
// kernel: policy_sac_forward.1
= control target key start
LH: loop header
LB: loop body
LE: loop exit
PB: predicated region body
PF: predicated region fallthrough
CT: control target
= control target key end

     0   :  { %16 = vsyncpa [#allocation3], 0  ;;  %v662_v3 = vmov 0.0|0.0   ;;  %vm663_vm0 = vmmov 0   ;;  %v664_v6 = vmov 0.0   ;;  %s899_s0 = inlined_call_operand.vmem [shape: f32[2,32], index: 0, kind: input, shape index: {}]   ;;  %s900_s1 = inlined_call_operand.vmem [shape: f32[32,128], index: 1, kind: input, shape index: {}]   ;;  %s901_s2 = inlined_call_operand.vmem [shape: f32[1,128], index: 2, kind: input, shape index: {}]   ;;  %s902_s3 = inlined_call_operand.vmem [shape: f32[128,64], index: 3, kind: input, shape index: {}]   ;;  %s903_s4 = inlined_call_operand.vmem [shape: f32[1,64], index: 4, kind: input, shape index: {}]   ;;  %s904_s5 = inlined_call_operand.vmem [shape: f32[64,4], index: 5, kind: input, shape index: {}]   ;;  %s905_s6 = inlined_call_operand.vmem [shape: f32[1,4], index: 6, kind: input, shape index: {}]   ;;  %s906_s7 = inlined_call_operand.vmem [shape: f32[64,4], index: 7, kind: input, shape index: {}]   ;;  %s907_s8 = inlined_call_operand.vmem [shape: f32[1,4], index: 8, kind: input, shape index: {}]   ;;  %s908_s9 = inlined_call_operand.hbm [shape: f32[2,4], index: 9, kind: output, shape index: {0}]   ;;  %s909_s10 = inlined_call_operand.hbm [shape: f32[2,4], index: 10, kind: output, shape index: {1}]  }
   0x1   :  { %v37_v0 = vld [vmem:[%s900_s1] sm:$0xff]  ;;  %v38_v1 = vld [vmem:[%s900_s1 + $0x8] sm:$0xff]  ;;  %v39_v2 = vld [vmem:[%s900_s1 + $0x10] sm:$0xff]  ;;  %555 = vmatprep.subr.bf16.mxu0 %v662_v3  ;;  %479 = vmatprep.mubr.msk.f32.mxu0 %vm663_vm0, %v664_v6 }
   0x2   :  { %v556_v4 = vpack.c.bf16 %v38_v1, %v37_v0  ;;  %v40_v5 = vld [vmem:[%s900_s1 + $0x18] sm:$0xff]  ;;  %v123_v7 = vld [vmem:[%s902_s3] sm:$0xff]  ;;  %561 = vmatprep.subr.bf16.mxu1 %v662_v3  ;;  %v124_v8 = vld [vmem:[%s902_s3 + $0x8] sm:$0xff]  ;;  %514 = vmatprep.mubr.msk.f32.mxu1 %vm663_vm0, %v664_v6 }
   0x3   :  { %v125_v9 = vld [vmem:[%s902_s3 + $0x10] sm:$0xff]  ;;  %v126_v10 = vld [vmem:[%s902_s3 + $0x18] sm:$0xff]  ;;  %v559_v11 = vpack.c.bf16 %v40_v5, %v39_v2  ;;  %v562_v12 = vpack.c.bf16 %v124_v8, %v123_v7  ;;  %v127_v14 = vld [vmem:[%s902_s3 + $0x20] sm:$0xff] }
   0x4   :  { %557 = vmatpush3.bf16.msra.mxu0 %v556_v4  ;;  %v565_v13 = vpack.c.bf16 %v126_v10, %v125_v9  ;;  %v128_v15 = vld [vmem:[%s902_s3 + $0x28] sm:$0xff] }
   0x5   :  { %558 = vmatprep.subr.bf16.mxu0 %v662_v3  ;;  %563 = vmatpush3.bf16.msra.mxu1 %v562_v12 }
   0x6   :  { %564 = vmatprep.subr.bf16.mxu1 %v662_v3 }
   0x7   :  { %17 = vsyncpa [#allocation5], 0  ;;  %v36_v16 = vld [vmem:[%s899_s0] sm:$0x3]  ;;  %vm48_vm1 = vcmask 261120   ;;  %v568_v17 = vpack.c.bf16 %v128_v15, %v127_v14  ;;  %v129_v18 = vld [vmem:[%s902_s3 + $0x30] sm:$0xff] }
   0x8   :  { %560 = vmatpush3.bf16.msra.mxu0 %v559_v11  ;;  %v130_v19 = vld [vmem:[%s902_s3 + $0x38] sm:$0xff]  ;;  %v131_v21 = vld [vmem:[%s902_s3 + $0x40] sm:$0xff]  ;;  %v132_v22 = vld [vmem:[%s902_s3 + $0x48] sm:$0xff]  ;;  %vm232_vm2 = vcmask 523264   ;;  %s665_s22 = smov [#allocation2]   ;;  %vm306_vm3 = vcmask 25600  }
   0x9   :  { %585 = vmatprep.subr.bf16.mxu0 %v662_v3  ;;  %566 = vmatpush3.bf16.msra.mxu1 %v565_v13  ;;  %v571_v20 = vpack.c.bf16 %v130_v19, %v129_v18  ;;  %v574_v23 = vpack.c.bf16 %v132_v22, %v131_v21  ;;  %v133_v24 = vld [vmem:[%s902_s3 + $0x50] sm:$0xff]  ;;  %v134_v25 = vld [vmem:[%s902_s3 + $0x58] sm:$0xff]  ;;  %v135_v27 = vld [vmem:[%s902_s3 + $0x60] sm:$0xff]  ;;  %s402_s23 = sshll.u32 %s665_s22, 4  ;;  %s403_s23 = int_to_ptr.vmem [resolvable:$true] %s402_s23 }
   0xa   :  { %567 = vmatprep.subr.bf16.mxu1 %v662_v3  ;;  %v577_v26 = vpack.c.bf16 %v134_v25, %v133_v24  ;;  %v136_v28 = vld [vmem:[%s902_s3 + $0x68] sm:$0xff]  ;;  %v137_v30 = vld [vmem:[%s902_s3 + $0x70] sm:$0xff]  ;;  %v138_v31 = vld [vmem:[%s902_s3 + $0x78] sm:$0xff]  ;;  %p619_p1 = scmp.lt.s32.totalorder %s403_s23, %s403_s23 }
   0xb   :  { %480 = vmatmul.mubr.msk.f32.vlgmr.msra.gmra.mrb[0].mxu0 %vm48_vm1, %v36_v16  ;;  %v580_v29 = vpack.c.bf16 %v136_v28, %v135_v27  ;;  %v583_v32 = vpack.c.bf16 %v138_v31, %v137_v30  ;;  %v217_v33 = vld [vmem:[%s904_s5] sm:$0xff]  ;;  %v218_v34 = vld [vmem:[%s904_s5 + $0x8] sm:$0xff]  ;;  %v219_v35 = vld [vmem:[%s904_s5 + $0x10] sm:$0xff] }
   0xc   :  { %533 = vmatprep.mubr.msk.f32.mxu0 %vm663_vm0, %v664_v6  ;;  %v586_v36 = vpack.c.bf16 %v218_v34, %v217_v33  ;;  %v220_v37 = vld [vmem:[%s904_s5 + $0x18] sm:$0xff]  ;;  %v221_v39 = vld [vmem:[%s904_s5 + $0x20] sm:$0xff]  ;;  %v222_v40 = vld [vmem:[%s904_s5 + $0x28] sm:$0xff] }
   0xd   :  { %569 = vmatpush3.bf16.msra.mxu1 %v568_v17  ;;  %v589_v38 = vpack.c.bf16 %v220_v37, %v219_v35  ;;  %v592_v41 = vpack.c.bf16 %v222_v40, %v221_v39  ;;  %v424_v42 = vld [vmem:[%s901_s2] ss:$0 sm:$0xff]  ;;  %v223_v47 = vld [vmem:[%s904_s5 + $0x30] sm:$0xff]  ;;  %v224_v48 = vld [vmem:[%s904_s5 + $0x38] sm:$0xff] }
   0xe   :  { %570 = vmatprep.subr.bf16.mxu1 %v662_v3  ;;  %587 = vmatpush3.bf16.msra.mxu0 %v586_v36  ;;  %v595_v49 = vpack.c.bf16 %v224_v48, %v223_v47  ;;  %v426_v50 = vld [vmem:[%s903_s4] ss:$0 sm:$0xff]  ;;  %v309_v52 = vld [vmem:[%s906_s7 + $0x8] sm:$0xff]  ;;  %v310_v58 = vld [vmem:[%s906_s7 + $0x10] sm:$0xff] }
   0xf   :  { %588 = vmatprep.subr.bf16.mxu0 %v662_v3  ;;  %v308_v51 = vld [vmem:[%s906_s7] sm:$0xff]  ;;  %v311_v59 = vld [vmem:[%s906_s7 + $0x18] sm:$0xff]  ;;  %v313_v62 = vld [vmem:[%s906_s7 + $0x28] sm:$0xff] }
  0x10   :  { %v598_v56 = vpack.c.bf16 %v309_v52, %v308_v51  ;;  %v601_v60 = vpack.c.bf16 %v311_v59, %v310_v58  ;;  %v312_v61 = vld [vmem:[%s906_s7 + $0x20] sm:$0xff]  ;;  %v314_v0 = vld [vmem:[%s906_s7 + $0x30] sm:$0xff]  ;;  %v315_v1 = vld [vmem:[%s906_s7 + $0x38] sm:$0xff]  ;;  %s614_s7 = scalar_lea.vmem %s403_s23, 32 }
  0x11   :  { %572 = vmatpush3.bf16.msra.mxu1 %v571_v20  ;;  %v604_v63 = vpack.c.bf16 %v313_v62, %v312_v61  ;;  %v607_v2 = vpack.c.bf16 %v315_v1, %v314_v0  ;;  %v427_v4 = vld [vmem:[%s905_s6] ss:$0 sm:$0xff]  ;;  %p615_p0 = scmp.ne.s32.totalorder %s403_s23, %s614_s7  ;;  %p620_p2 = scmp.lt.s32.totalorder %s614_s7, %s614_s7 }
  0x12   :  { %573 = vmatprep.subr.bf16.mxu1 %v662_v3  ;;  %590 = vmatpush3.bf16.msra.mxu0 %v589_v38 }
  0x13   :  { %591 = vmatprep.subr.bf16.mxu0 %v662_v3  ;;  %p621_p3 = por %p620_p2, %p619_p1 }
  0x15   :  { %575 = vmatpush3.bf16.msra.mxu1 %v574_v23  ;;  %p622_p4 = pnand %p621_p3, %p615_p0 }
  0x16   :  { %576 = vmatprep.subr.bf16.mxu1 %v662_v3  ;;  %593 = vmatpush3.bf16.msra.mxu0 %v592_v41 }
  0x17   :  { %594 = vmatprep.subr.bf16.mxu0 %v662_v3 }
  0x19   :  { %578 = vmatpush3.bf16.msra.mxu1 %v577_v26 }
  0x1a   :  { %579 = vmatprep.subr.bf16.mxu1 %v662_v3  ;;  %596 = vmatpush3.bf16.msra.mxu0 %v595_v49 }
  0x1b   :  { %597 = vmatprep.subr.bf16.mxu0 %v662_v3 }
  0x1d   :  { %581 = vmatpush3.bf16.msra.mxu1 %v580_v29 }
  0x1e   :  { %582 = vmatprep.subr.bf16.mxu1 %v662_v3 }
  0x21   :  { %584 = vmatpush3.bf16.msra.mxu1 %v583_v32 }
  0xde   :  { %v118_v43 = vpop.f32.mrb[0].mxu0 }
  0xdf   :  { %v119_v44 = vadd.f32 %v424_v42, %v118_v43  ;;  %v481_v45 = vpop.f32.mrb[1].mxu0 }
  0xe1   :  { %v122_v46 = vmax.f32 %v119_v44, 0.0 }
  0xe3   :  { %515 = vmatmul.mubr.f32.vlgmr.msra.gmra.mrb[0].mxu1 %v122_v46 }
 0x1b6   :  { %v212_v53 = vpop.f32.mrb[0].mxu1 }
 0x1b7   :  { %v213_v54 = vadd.f32 %v426_v50, %v212_v53  ;;  %v516_v55 = vpop.f32.mrb[1].mxu1 }
 0x1b9   :  { %v216_v57 = vmax.f32 %v213_v54, 0.0 }
 0x1bb   :  { %534 = vmatmul.mubr.msk.f32.vlgmr.msra.gmra.mrb[2].mxu0 %vm232_vm2, %v216_v57 }
 0x1bc   :  { %599 = vmatpush3.bf16.msra.mxu0 %v598_v56  ;;  %552 = vmatprep.mubr.msk.f32.mxu0 %vm663_vm0, %v664_v6 }
 0x1bd   :  { %600 = vmatprep.subr.bf16.mxu0 %v662_v3 }
 0x1c0   :  { %602 = vmatpush3.bf16.msra.mxu0 %v601_v60 }
 0x1c1   :  { %603 = vmatprep.subr.bf16.mxu0 %v662_v3 }
 0x1c4   :  { %605 = vmatpush3.bf16.msra.mxu0 %v604_v63 }
 0x1c5   :  { %606 = vmatprep.subr.bf16.mxu0 %v662_v3 }
 0x1c8   :  { %608 = vmatpush3.bf16.msra.mxu0 %v607_v2 }
 0x1cb   :  { %553 = vmatmul.mubr.msk.f32.vlgmr.msra.gmra.mrb[4].mxu0 %vm232_vm2, %v216_v57 }
 0x28e   :  { %v302_v5 = vpop.f32.mrb[2].mxu0 }
 0x28f   :  { %v303_v6 = vadd.f32 %v427_v4, %v302_v5  ;;  %v535_v7 = vpop.f32.mrb[3].mxu0 }
 0x291   :  { %307 = vst.msk [vmem:[#allocation2] sm:$0x3] %vm306_vm3, %v303_v6 }
 0x292   :  { %625 = shalt.err (!%p622_p4)
}
 0x293   :  { %s626_s6 = scalar_lea.hbm %s908_s9, 32 }
 0x294   :  { %p627_p5 = scmp.ne.s32.totalorder %s908_s9, %s626_s6  ;;  %p630_p6 = scmp.lt.u32.totalorder %s626_s6, %s908_s9 }
 0x296   :  { %p632_p7 = pnand %p630_p6, %p627_p5 }
 0x298   :  { %635 = shalt.err (!%p632_p7)
}
 0x299   :  { %405 = dma.vmem_to_hbm [thread:$0]  %s403_s23, 32, %s908_s9, [#allocation3]   ;;  %v429_v3 = vld [vmem:[%s907_s8] ss:$0 sm:$0xff] }
 0x29a   :  { %s666_s5 = smov [#allocation4]  }
 0x29b   :  { %s412_s12 = sshll.u32 %s666_s5, 4  ;;  %s413_s12 = int_to_ptr.vmem [resolvable:$true] %s412_s12 }
 0x29c   :  { %s636_s13 = scalar_lea.vmem %s413_s12, 32  ;;  %p641_p9 = scmp.lt.s32.totalorder %s413_s12, %s413_s12 }
 0x29d   :  { %p637_p8 = scmp.ne.s32.totalorder %s413_s12, %s636_s13  ;;  %p642_p10 = scmp.lt.s32.totalorder %s636_s13, %s636_s13 }
 0x29e   :  { %v389_v8 = vpop.f32.mrb[4].mxu0 }
 0x29f   :  { %v390_v9 = vadd.f32 %v429_v3, %v389_v8  ;;  %v554_v10 = vpop.f32.mrb[5].mxu0  ;;  %p643_p11 = por %p642_p10, %p641_p9 }
 0x2a1   :  { %v393_v11 = vmax.f32 %v390_v9, -20.0  ;;  %p644_p12 = pnand %p643_p11, %p637_p8 }
 0x2a3   :  { %v394_v12 = vmin.f32 %v393_v11, 2.0 }
 0x2a5   :  { %395 = vst.msk [vmem:[#allocation4] sm:$0x3] %vm306_vm3, %v394_v12 }
 0x2a6   :  { %647 = shalt.err (!%p644_p12)
}
 0x2a7   :  { %s648_s8 = scalar_lea.hbm %s909_s10, 32 }
 0x2a8   :  { %p649_p13 = scmp.ne.s32.totalorder %s909_s10, %s648_s8  ;;  %p652_p0 = scmp.lt.u32.totalorder %s648_s8, %s909_s10 }
 0x2aa   :  { %p654_p1 = pnand %p652_p0, %p649_p13 }
 0x2ac   :  { %657 = shalt.err (!%p654_p1)
}
 0x2ad   :  { %415 = dma.vmem_to_hbm [thread:$0]  %s413_s12, 32, %s909_s10, [#allocation5]  }
 0x2ae   :  { %658 = dma.done.wait [#allocation3], 32  }
 0x2af   :  { %659 = vsyncadd [#allocation3], 4294967264 }
 0x2b0   :  { %660 = dma.done.wait [#allocation5], 32  }
 0x2b1   :  { %661 = vsyncadd [#allocation5], 4294967264 }
 0x2b2   :  { %422 = vsyncpa [#allocation3], 1 }
 0x2b3   :  { %423 = vsyncpa [#allocation5], 1 }

</bundles_post_ra>
